<compile_context>
chip_gen: v5e
topology: v5e:2x2
jax: 0.10.0
libtpu: 0.0.40
codegen_flags: <defaults>
</compile_context>

<pallas_src>
import numpy as np
import jax
import jax.numpy as jnp
from jax.experimental import pallas as pl
from jax.experimental.pallas import tpu as pltpu

# ----------------------- synthetic MODEL_PARAMS / CONFIG -----------------------
BATCH_SIZE = 2                                          # CONFIG['batch_size']
CBT_RESOLUTION = 8                                      # MODEL_PARAMS['CBT_resolution']
ROI2 = 16                                               # Modality2 N_ROIs
N_FEAT2 = ROI2 * (ROI2 - 1) // 2                        # 120 (Modality2 n_features)
N_FEAT1 = CBT_RESOLUTION * (CBT_RESOLUTION - 1) // 2    # 28  (Modality1 n_features)
INTERMEDIATE_RES = 64                                   # intermediate_resolution
INTERMEDIATE_CH = 32                                    # intermediate_channel
DROPOUT_PROB = 0.1                                      # unused in eval mode

PAD = 128           # lane-padded width of every layer (one full vreg lane dim)
N_LAYERS = 6        # conv23, conv2, conv1, fused{lin1|conv24}, fused{lin2|conv25}, conv26
N_OUT_SLOTS = 4     # z, c1 (contains i1), c2 (contains cbt), y


# ----------------------------- Pallas kernel -----------------------------------
def _model2_kernel(x_ref, w_ref, b_ref, out_ref):
    def layer(v, i):
        w = w_ref[i * PAD:(i + 1) * PAD, :]        # static slice -> (128, 128) bf16
        b = b_ref[i:i + 1, :]                      # static slice -> (1, 128) f32
        pre = jnp.dot(v.astype(jnp.bfloat16), w,
                      preferred_element_type=jnp.float32) + b
        # sigmoid(x) == 0.5 * tanh(0.5 * x) + 0.5  -> tanh runs on the EUP,
        # no VALU divide on the serial critical path.
        return 0.5 * jnp.tanh(0.5 * pre) + 0.5

    x = x_ref[...]                 # (1, 128) f32; lanes [120:128] are zero

    # ---- encoder (dropout = identity in eval mode) ----
    x1 = layer(x, 0)               # conv23: 120 -> 64
    x2 = layer(x1, 1)              # conv2 :  64 -> 28
    z = layer(x2, 2)               # conv1 :  28 -> 28

    # ---- fused normalizer + decoder head ----
    c1 = layer(z, 3)               # {linear1(folded) | conv24}: 28 -> {i1 0:32 | y1 32:60}
    c2 = layer(c1, 4)              # {linear2 | conv25}: c1 -> {cbt 0:28 | y2 32:96}

    # ---- decoder tail ----
    y = layer(c2, 5)               # conv26 (rows 32:96 only): y2 -> 120

    # single lane-dense output slab, 128-aligned unmasked stores
    out_ref[:, 0 * PAD:1 * PAD] = z    # wrapper slices lanes 0:28   -> z
    out_ref[:, 1 * PAD:2 * PAD] = c1   # wrapper slices lanes 0:32   -> i1
    out_ref[:, 2 * PAD:3 * PAD] = c2   # wrapper slices lanes 0:28   -> cbt
    out_ref[:, 3 * PAD:4 * PAD] = y    # wrapper slices lanes 0:120  -> y


_VMEM = pl.BlockSpec(memory_space=pltpu.MemorySpace.VMEM)


def model2_core(x_pad, w_slab, b_slab):
    return pl.pallas_call(
        _model2_kernel,
        out_shape=jax.ShapeDtypeStruct((1, N_OUT_SLOTS * PAD), jnp.float32),
        in_specs=[_VMEM, _VMEM, _VMEM],
        out_specs=_VMEM,
        cost_estimate=pl.CostEstimate(
            flops=2 * N_LAYERS * PAD * PAD,
            transcendentals=N_LAYERS * PAD,
            bytes_accessed=(4 * PAD                       # x (f32)
                            + 2 * N_LAYERS * PAD * PAD    # weights (bf16)
                            + 4 * N_LAYERS * PAD          # biases (f32)
                            + 4 * N_OUT_SLOTS * PAD),     # output slab (f32)
        ),
    )(x_pad, w_slab, b_slab)


@jax.jit
def model2_pallas(x, w_slab, b_slab):
    """Pads x, runs the fused kernel, slices true widths back out."""
    x_pad = jnp.pad(x, ((0, 0), (0, PAD - N_FEAT2)))
    out = model2_core(x_pad, w_slab, b_slab)
    z = out[:, 0 * PAD:0 * PAD + N_FEAT1]
    i1 = out[:, 1 * PAD:1 * PAD + INTERMEDIATE_CH]
    cbt = out[:, 2 * PAD:2 * PAD + N_FEAT1]
    y = out[:, 3 * PAD:3 * PAD + N_FEAT2]
    return z, i1, cbt, y


# ----------------------------- JAX glue (antiVectorize) ------------------------
def anti_vectorize(vec, m):
    """vec of length m*(m-1)/2 -> symmetric [m, m] matrix, zero diagonal."""
    iu = jnp.triu_indices(m, k=1)
    mat = jnp.zeros((m, m), vec.dtype).at[iu].set(vec)
    return mat + mat.T


def batch_anti_vectorize(x, m):
    return jax.vmap(lambda v: anti_vectorize(v, m))(x)


def model2_forward(x, w_slab, b_slab):
    """Full Model2.forward: (x_matrix, z_matrix, y_matrix, i1, cbt_matrix)."""
    z, i1, cbt, y = model2_pallas(x, w_slab, b_slab)
    x_matrix = batch_anti_vectorize(x, ROI2)                 # [1, ROI2, ROI2]
    z_matrix = batch_anti_vectorize(z, CBT_RESOLUTION)       # [1, CBT, CBT]
    y_matrix = batch_anti_vectorize(y, ROI2)                 # [1, ROI2, ROI2]
    cbt_matrix = anti_vectorize(cbt[0], CBT_RESOLUTION)      # [CBT, CBT]
    return x_matrix, z_matrix, y_matrix, i1[0], cbt_matrix


# ----------------------------- parameter init / packing ------------------------
def init_params(key):
    def dense(key, fan_in, fan_out):
        kw, kb = jax.random.split(key)
        scale = 1.0 / jnp.sqrt(fan_in)
        w = jax.random.uniform(kw, (fan_in, fan_out), jnp.float32, -scale, scale)
        b = jax.random.uniform(kb, (1, fan_out), jnp.float32, -scale, scale)
        return w, b

    keys = jax.random.split(key, 8)
    w23, b23 = dense(keys[0], N_FEAT2, INTERMEDIATE_RES)
    w2, b2 = dense(keys[1], INTERMEDIATE_RES, N_FEAT1)
    w1, b1 = dense(keys[2], N_FEAT1, N_FEAT1)
    # normalizer linears, stored pre-transposed ([in, out], matching x @ W)
    wl1, bl1 = dense(keys[3], BATCH_SIZE * N_FEAT1, INTERMEDIATE_CH)
    wl2, bl2 = dense(keys[4], INTERMEDIATE_CH, N_FEAT1)
    w24, b24 = dense(keys[5], N_FEAT1, N_FEAT1)
    w25, b25 = dense(keys[6], N_FEAT1, INTERMEDIATE_RES)
    w26, b26 = dense(keys[7], INTERMEDIATE_RES, N_FEAT2)
    return (w23, b23, w2, b2, w1, b1, wl1, bl1, wl2, bl2,
            w24, b24, w25, b25, w26, b26)


def pack_params(params):
    """One-time host-side packing into a bf16 weight slab + f32 bias slab."""
    (w23, b23, w2, b2, w1, b1, wl1, bl1, wl2, bl2,
     w24, b24, w25, b25, w26, b26) = [np.asarray(p, np.float32) for p in params]

    # repeat_to_batch_size(z, 2).view(-1) == concat([z, z]); fold the two
    # 28-row blocks of wl1 so the kernel needs no tile of z.
    # NOTE: exact only for BATCH_SIZE == 2.
    wl1_folded = wl1[:N_FEAT1] + wl1[N_FEAT1:]            # [28, 32]

    w_slab = np.zeros((N_LAYERS * PAD, PAD), np.float32)
    b_slab = np.zeros((N_LAYERS, PAD), np.float32)

    def put(layer_idx, w, b, row0, col0):
        k, n = w.shape
        w_slab[layer_idx * PAD + row0:layer_idx * PAD + row0 + k, col0:col0 + n] = w
        b_slab[layer_idx, col0:col0 + n] = b.reshape(-1)

    # encoder
    put(0, w23, b23, 0, 0)                    # 120 -> 64
    put(1, w2, b2, 0, 0)                      # 64  -> 28
    put(2, w1, b1, 0, 0)                      # 28  -> 28
    # fused stage A: z (rows 0:28) -> i1 (lanes 0:32) | y1 (lanes 32:60)
    put(3, wl1_folded, bl1, 0, 0)
    put(3, w24, b24, 0, 32)
    # fused stage B: i1 (rows 0:32) -> cbt (lanes 0:28); y1 (rows 32:60) -> y2 (lanes 32:96)
    put(4, wl2, bl2, 0, 0)
    put(4, w25, b25, 32, 32)
    # decoder tail: y2 (rows 32:96) -> y (lanes 0:120); rows 0:32 stay zero so
    # the cbt values living in c2 lanes 0:28 never leak into y.
    put(5, w26, b26, 32, 0)

    return jnp.asarray(w_slab, jnp.bfloat16), jnp.asarray(b_slab, jnp.float32)


# ----------------------------- pure-JAX f32 reference ---------------------------
def model2_ref(x, params):
    (w23, b23, w2, b2, w1, b1, wl1, bl1, wl2, bl2,
     w24, b24, w25, b25, w26, b26) = params
    s = jax.nn.sigmoid
    x1 = s(x @ w23 + b23)
    x2 = s(x1 @ w2 + b2)
    z = s(x2 @ w1 + b1)
    z_flat = jnp.tile(z, (1, BATCH_SIZE))                 # repeat(...).view(-1)
    i1 = s(z_flat @ wl1 + bl1)
    cbt = s(i1 @ wl2 + bl2)
    y1 = s(z @ w24 + b24)
    y2 = s(y1 @ w25 + b25)
    y = s(y2 @ w26 + b26)
    return z, i1, cbt, y


# ----------------------------------- main ---------------------------------------
if __name__ == "__main__":
    key = jax.random.PRNGKey(0)
    k_x, k_p = jax.random.split(key)

    # x: node features of a 1-node graph, shape [1, ROI2*(ROI2-1)/2] = [1, 120].
    # edge_index is [[0],[0]] (self-loop only) -> GCN collapses to a linear
    # layer, so it is not needed inside the kernel.
    x = jax.random.uniform(k_x, (1, N_FEAT2), jnp.float32)
    params = init_params(k_p)
    w_slab, b_slab = pack_params(params)      # packing happens once, not per call

    outs = model2_forward(x, w_slab, b_slab)
    outs = jax.block_until_ready(outs)
    x_matrix, z_matrix, y_matrix, i1, cbt_matrix = outs

    # shape / structural sanity
    assert x_matrix.shape == (1, ROI2, ROI2)
    assert z_matrix.shape == (1, CBT_RESOLUTION, CBT_RESOLUTION)
    assert y_matrix.shape == (1, ROI2, ROI2)
    assert i1.shape == (INTERMEDIATE_CH,)
    assert cbt_matrix.shape == (CBT_RESOLUTION, CBT_RESOLUTION)
    assert bool(jnp.allclose(cbt_matrix, cbt_matrix.T))
    assert bool(jnp.allclose(jnp.diagonal(cbt_matrix), 0.0))

    # numerics vs un-packed pure-f32 reference (validates packing, branch
    # fusion and the wl1 fold; tolerance loosened for bf16 weights/operands)
    zk, i1k, cbtk, yk = jax.block_until_ready(model2_pallas(x, w_slab, b_slab))
    zr, i1r, cbtr, yr = model2_ref(x, params)
    for got, ref in ((zk, zr), (i1k, i1r), (cbtk, cbtr), (yk, yr)):
        assert got.shape == ref.shape
        assert bool(jnp.allclose(got, ref, atol=1.5e-2, rtol=1.5e-2)), \
            "kernel/ref mismatch"

    print("KERNEL_OK")
</pallas_src>

<mosaic_0001>
module attributes {stable_mosaic.version = 11 : i64} {
  func.func @_model2_kernel(%arg0: memref<1x128xf32, #tpu.memory_space<vmem>>, %arg1: memref<768x128xbf16, #tpu.memory_space<vmem>>, %arg2: memref<6x128xf32, #tpu.memory_space<vmem>>, %arg3: memref<1x512xf32, #tpu.memory_space<vmem>>) attributes {dimension_semantics = [], scalar_prefetch = 0 : i64, scratch_operands = 0 : i64, tpu.core_type = #tpu.core_type<tc>} {
    %c0 = arith.constant 0 : index
    %c0_0 = arith.constant 0 : index
    %0 = vector.load %arg0[%c0, %c0_0] : memref<1x128xf32, #tpu.memory_space<vmem>>, vector<1x128xf32>
    %c0_1 = arith.constant 0 : index
    %c0_2 = arith.constant 0 : index
    %1 = vector.load %arg1[%c0_1, %c0_2] : memref<768x128xbf16, #tpu.memory_space<vmem>>, vector<128x128xbf16>
    %c0_3 = arith.constant 0 : index
    %c0_4 = arith.constant 0 : index
    %2 = vector.load %arg2[%c0_3, %c0_4] : memref<6x128xf32, #tpu.memory_space<vmem>>, vector<1x128xf32>
    %3 = arith.truncf %0 : vector<1x128xf32> to vector<1x128xbf16>
    %cst = arith.constant dense<0.000000e+00> : vector<1x128xf32>
    %4 = tpu.matmul %3, %1, %cst {dimension_numbers = #tpu.dot_dimension_numbers<[1], [0], [0], [1], [0, 0, 1, 1], [], []>} : vector<1x128xbf16>, vector<128x128xbf16>, vector<1x128xf32> -> vector<1x128xf32>
    %5 = arith.addf %4, %2 : vector<1x128xf32>
    %cst_5 = arith.constant 5.000000e-01 : f32
    %6 = vector.broadcast %cst_5 : f32 to vector<1x128xf32>
    %7 = arith.mulf %6, %5 : vector<1x128xf32>
    %8 = math.tanh %7 : vector<1x128xf32>
    %cst_6 = arith.constant 5.000000e-01 : f32
    %9 = vector.broadcast %cst_6 : f32 to vector<1x128xf32>
    %10 = arith.mulf %9, %8 : vector<1x128xf32>
    %cst_7 = arith.constant 5.000000e-01 : f32
    %11 = vector.broadcast %cst_7 : f32 to vector<1x128xf32>
    %12 = arith.addf %10, %11 : vector<1x128xf32>
    %c128 = arith.constant 128 : index
    %c0_8 = arith.constant 0 : index
    %13 = vector.load %arg1[%c128, %c0_8] : memref<768x128xbf16, #tpu.memory_space<vmem>>, vector<128x128xbf16>
    %c1 = arith.constant 1 : index
    %c0_9 = arith.constant 0 : index
    %14 = vector.load %arg2[%c1, %c0_9] : memref<6x128xf32, #tpu.memory_space<vmem>>, vector<1x128xf32>
    %15 = arith.truncf %12 : vector<1x128xf32> to vector<1x128xbf16>
    %cst_10 = arith.constant dense<0.000000e+00> : vector<1x128xf32>
    %16 = tpu.matmul %15, %13, %cst_10 {dimension_numbers = #tpu.dot_dimension_numbers<[1], [0], [0], [1], [0, 0, 1, 1], [], []>} : vector<1x128xbf16>, vector<128x128xbf16>, vector<1x128xf32> -> vector<1x128xf32>
    %17 = arith.addf %16, %14 : vector<1x128xf32>
    %cst_11 = arith.constant 5.000000e-01 : f32
    %18 = vector.broadcast %cst_11 : f32 to vector<1x128xf32>
    %19 = arith.mulf %18, %17 : vector<1x128xf32>
    %20 = math.tanh %19 : vector<1x128xf32>
    %cst_12 = arith.constant 5.000000e-01 : f32
    %21 = vector.broadcast %cst_12 : f32 to vector<1x128xf32>
    %22 = arith.mulf %21, %20 : vector<1x128xf32>
    %cst_13 = arith.constant 5.000000e-01 : f32
    %23 = vector.broadcast %cst_13 : f32 to vector<1x128xf32>
    %24 = arith.addf %22, %23 : vector<1x128xf32>
    %c256 = arith.constant 256 : index
    %c0_14 = arith.constant 0 : index
    %25 = vector.load %arg1[%c256, %c0_14] : memref<768x128xbf16, #tpu.memory_space<vmem>>, vector<128x128xbf16>
    %c2 = arith.constant 2 : index
    %c0_15 = arith.constant 0 : index
    %26 = vector.load %arg2[%c2, %c0_15] : memref<6x128xf32, #tpu.memory_space<vmem>>, vector<1x128xf32>
    %27 = arith.truncf %24 : vector<1x128xf32> to vector<1x128xbf16>
    %cst_16 = arith.constant dense<0.000000e+00> : vector<1x128xf32>
    %28 = tpu.matmul %27, %25, %cst_16 {dimension_numbers = #tpu.dot_dimension_numbers<[1], [0], [0], [1], [0, 0, 1, 1], [], []>} : vector<1x128xbf16>, vector<128x128xbf16>, vector<1x128xf32> -> vector<1x128xf32>
    %29 = arith.addf %28, %26 : vector<1x128xf32>
    %cst_17 = arith.constant 5.000000e-01 : f32
    %30 = vector.broadcast %cst_17 : f32 to vector<1x128xf32>
    %31 = arith.mulf %30, %29 : vector<1x128xf32>
    %32 = math.tanh %31 : vector<1x128xf32>
    %cst_18 = arith.constant 5.000000e-01 : f32
    %33 = vector.broadcast %cst_18 : f32 to vector<1x128xf32>
    %34 = arith.mulf %33, %32 : vector<1x128xf32>
    %cst_19 = arith.constant 5.000000e-01 : f32
    %35 = vector.broadcast %cst_19 : f32 to vector<1x128xf32>
    %36 = arith.addf %34, %35 : vector<1x128xf32>
    %c384 = arith.constant 384 : index
    %c0_20 = arith.constant 0 : index
    %37 = vector.load %arg1[%c384, %c0_20] : memref<768x128xbf16, #tpu.memory_space<vmem>>, vector<128x128xbf16>
    %c3 = arith.constant 3 : index
    %c0_21 = arith.constant 0 : index
    %38 = vector.load %arg2[%c3, %c0_21] : memref<6x128xf32, #tpu.memory_space<vmem>>, vector<1x128xf32>
    %39 = arith.truncf %36 : vector<1x128xf32> to vector<1x128xbf16>
    %cst_22 = arith.constant dense<0.000000e+00> : vector<1x128xf32>
    %40 = tpu.matmul %39, %37, %cst_22 {dimension_numbers = #tpu.dot_dimension_numbers<[1], [0], [0], [1], [0, 0, 1, 1], [], []>} : vector<1x128xbf16>, vector<128x128xbf16>, vector<1x128xf32> -> vector<1x128xf32>
    %41 = arith.addf %40, %38 : vector<1x128xf32>
    %cst_23 = arith.constant 5.000000e-01 : f32
    %42 = vector.broadcast %cst_23 : f32 to vector<1x128xf32>
    %43 = arith.mulf %42, %41 : vector<1x128xf32>
    %44 = math.tanh %43 : vector<1x128xf32>
    %cst_24 = arith.constant 5.000000e-01 : f32
    %45 = vector.broadcast %cst_24 : f32 to vector<1x128xf32>
    %46 = arith.mulf %45, %44 : vector<1x128xf32>
    %cst_25 = arith.constant 5.000000e-01 : f32
    %47 = vector.broadcast %cst_25 : f32 to vector<1x128xf32>
    %48 = arith.addf %46, %47 : vector<1x128xf32>
    %c512 = arith.constant 512 : index
    %c0_26 = arith.constant 0 : index
    %49 = vector.load %arg1[%c512, %c0_26] : memref<768x128xbf16, #tpu.memory_space<vmem>>, vector<128x128xbf16>
    %c4 = arith.constant 4 : index
    %c0_27 = arith.constant 0 : index
    %50 = vector.load %arg2[%c4, %c0_27] : memref<6x128xf32, #tpu.memory_space<vmem>>, vector<1x128xf32>
    %51 = arith.truncf %48 : vector<1x128xf32> to vector<1x128xbf16>
    %cst_28 = arith.constant dense<0.000000e+00> : vector<1x128xf32>
    %52 = tpu.matmul %51, %49, %cst_28 {dimension_numbers = #tpu.dot_dimension_numbers<[1], [0], [0], [1], [0, 0, 1, 1], [], []>} : vector<1x128xbf16>, vector<128x128xbf16>, vector<1x128xf32> -> vector<1x128xf32>
    %53 = arith.addf %52, %50 : vector<1x128xf32>
    %cst_29 = arith.constant 5.000000e-01 : f32
    %54 = vector.broadcast %cst_29 : f32 to vector<1x128xf32>
    %55 = arith.mulf %54, %53 : vector<1x128xf32>
    %56 = math.tanh %55 : vector<1x128xf32>
    %cst_30 = arith.constant 5.000000e-01 : f32
    %57 = vector.broadcast %cst_30 : f32 to vector<1x128xf32>
    %58 = arith.mulf %57, %56 : vector<1x128xf32>
    %cst_31 = arith.constant 5.000000e-01 : f32
    %59 = vector.broadcast %cst_31 : f32 to vector<1x128xf32>
    %60 = arith.addf %58, %59 : vector<1x128xf32>
    %c640 = arith.constant 640 : index
    %c0_32 = arith.constant 0 : index
    %61 = vector.load %arg1[%c640, %c0_32] : memref<768x128xbf16, #tpu.memory_space<vmem>>, vector<128x128xbf16>
    %c5 = arith.constant 5 : index
    %c0_33 = arith.constant 0 : index
    %62 = vector.load %arg2[%c5, %c0_33] : memref<6x128xf32, #tpu.memory_space<vmem>>, vector<1x128xf32>
    %63 = arith.truncf %60 : vector<1x128xf32> to vector<1x128xbf16>
    %cst_34 = arith.constant dense<0.000000e+00> : vector<1x128xf32>
    %64 = tpu.matmul %63, %61, %cst_34 {dimension_numbers = #tpu.dot_dimension_numbers<[1], [0], [0], [1], [0, 0, 1, 1], [], []>} : vector<1x128xbf16>, vector<128x128xbf16>, vector<1x128xf32> -> vector<1x128xf32>
    %65 = arith.addf %64, %62 : vector<1x128xf32>
    %cst_35 = arith.constant 5.000000e-01 : f32
    %66 = vector.broadcast %cst_35 : f32 to vector<1x128xf32>
    %67 = arith.mulf %66, %65 : vector<1x128xf32>
    %68 = math.tanh %67 : vector<1x128xf32>
    %cst_36 = arith.constant 5.000000e-01 : f32
    %69 = vector.broadcast %cst_36 : f32 to vector<1x128xf32>
    %70 = arith.mulf %69, %68 : vector<1x128xf32>
    %cst_37 = arith.constant 5.000000e-01 : f32
    %71 = vector.broadcast %cst_37 : f32 to vector<1x128xf32>
    %72 = arith.addf %70, %71 : vector<1x128xf32>
    %c0_38 = arith.constant 0 : index
    %c0_39 = arith.constant 0 : index
    %73 = vector.load %arg3[%c0_38, %c0_39] : memref<1x512xf32, #tpu.memory_space<vmem>>, vector<1x128xf32>
    tpu.vector_store %arg3[%c0_38, %c0_39], %36 {strides = array<i32>} : memref<1x512xf32, #tpu.memory_space<vmem>>, vector<1x128xf32>,
    %c0_40 = arith.constant 0 : index
    %c128_41 = arith.constant 128 : index
    %74 = vector.load %arg3[%c0_40, %c128_41] : memref<1x512xf32, #tpu.memory_space<vmem>>, vector<1x128xf32>
    tpu.vector_store %arg3[%c0_40, %c128_41], %48 {strides = array<i32>} : memref<1x512xf32, #tpu.memory_space<vmem>>, vector<1x128xf32>,
    %c0_42 = arith.constant 0 : index
    %c256_43 = arith.constant 256 : index
    %75 = vector.load %arg3[%c0_42, %c256_43] : memref<1x512xf32, #tpu.memory_space<vmem>>, vector<1x128xf32>
    tpu.vector_store %arg3[%c0_42, %c256_43], %60 {strides = array<i32>} : memref<1x512xf32, #tpu.memory_space<vmem>>, vector<1x128xf32>,
    %c0_44 = arith.constant 0 : index
    %c384_45 = arith.constant 384 : index
    %76 = vector.load %arg3[%c0_44, %c384_45] : memref<1x512xf32, #tpu.memory_space<vmem>>, vector<1x128xf32>
    tpu.vector_store %arg3[%c0_44, %c384_45], %72 {strides = array<i32>} : memref<1x512xf32, #tpu.memory_space<vmem>>, vector<1x128xf32>,
    return
  }
}

</mosaic_0001>

<bundles_post_ra>
// kernel: model2_pallas.1
= control target key start
LH: loop header
LB: loop body
LE: loop exit
PB: predicated region body
PF: predicated region fallthrough
CT: control target
= control target key end

     0   :  { %8 = vsyncpa [#allocation3], 0  ;;  %s922_s0 = inlined_call_operand.vmem [shape: f32[1,128], index: 0, kind: input, shape index: {}]   ;;  %s923_s1 = inlined_call_operand.hbm [shape: bf16[768,128], index: 1, kind: input, shape index: {}]   ;;  %s924_s2 = inlined_call_operand.hbm [shape: f32[6,128], index: 2, kind: input, shape index: {}]   ;;  %s925_s3 = inlined_call_operand.vmem [shape: f32[1,512], index: 3, kind: output, shape index: {}]  }
   0x1   :  { %s16_s14 = sshll.u32 %s923_s1, 4  ;;  %s17_s14 = int_to_ptr.hbm [resolvable:$true] %s16_s14 }
   0x2   :  { %9 = vsyncpa [#allocation5], 0  ;;  %s865_s15 = smov [#allocation2]   ;;  %s30_s19 = sshll.u32 %s924_s2, 4  ;;  %s31_s19 = int_to_ptr.hbm [resolvable:$true] %s30_s19 }
   0x3   :  { %s18_s16 = sshll.u32 %s865_s15, 4  ;;  %s866_s20 = smov 64   ;;  %s19_s16 = int_to_ptr.vmem [resolvable:$true] %s18_s16 }
   0x4   :  { %s867_s21 = smov 4   ;;  %s868_s22 = smov [#allocation4]  }
   0x5   :  { %24 = dma.hbm_to_vmem [thread:$0]  %s17_s14, 6144, %s19_s16, [#allocation3], %s866_s20, %s866_s20, %s867_s21  }
   0x6   :  { %s32_s23 = sshll.u32 %s868_s22, 4  ;;  %s33_s23 = int_to_ptr.vmem [resolvable:$true] %s32_s23 }
   0x7   :  { %35 = dma.hbm_to_vmem [thread:$0]  %s31_s19, 128, %s33_s23, [#allocation5]  }
   0x8   :  { %861 = dma.done.wait [#allocation3], 6144  }
   0x9   :  { %862 = vsyncadd [#allocation3], 4294961152 }
   0xa   :  { %863 = dma.done.wait [#allocation5], 128  }
   0xb   :  { %864 = vsyncadd [#allocation5], 4294967168  ;;  %v756_v0 = vld [vmem:[#allocation2 + $0x38] sm:$0xff]  ;;  %v755_v1 = vld [vmem:[#allocation2 + $0x30] sm:$0xff]  ;;  %v543_v61 = vlaneseq }
   0xc   :  { %111 = vmatpush.bf16.msra.mxu0 %v756_v0  ;;  %v764_v2 = vld [vmem:[#allocation2 + $0x78] sm:$0xff]  ;;  %v763_v3 = vld [vmem:[#allocation2 + $0x70] sm:$0xff]  ;;  %v754_v4 = vld [vmem:[#allocation2 + $0x28] sm:$0xff] }
   0xd   :  { %194 = vmatpush.bf16.msra.mxu1 %v764_v2  ;;  %v762_v5 = vld [vmem:[#allocation2 + $0x68] sm:$0xff]  ;;  %v753_v6 = vld [vmem:[#allocation2 + $0x20] sm:$0xff]  ;;  %v752_v8 = vld [vmem:[#allocation2 + $0x18] sm:$0xff]  ;;  %vm898_vm0 = vcmp.lt.s32.totalorder %v543_v61, 128 }
   0xe   :  { %v761_v7 = vld [vmem:[#allocation2 + $0x60] sm:$0xff]  ;;  %v751_v9 = vld [vmem:[#allocation2 + $0x10] sm:$0xff]  ;;  %v750_v10 = vld [vmem:[#allocation2 + $0x8] sm:$0xff] }
   0xf   :  { %v749_v11 = vld [vmem:[#allocation2] sm:$0xff]  ;;  %v760_v14 = vld [vmem:[#allocation2 + $0x58] sm:$0xff]  ;;  %v759_v15 = vld [vmem:[#allocation2 + $0x50] sm:$0xff] }
  0x10   :  { %112 = vmatpush.bf16.msra.mxu0 %v755_v1  ;;  %v44_v12 = vld [vmem:[%s922_s0] sm:$0x1]  ;;  %v758_v16 = vld [vmem:[#allocation2 + $0x48] sm:$0xff]  ;;  %v772_v18 = vld [vmem:[#allocation2 + $0xb8] sm:$0xff] }
  0x11   :  { %195 = vmatpush.bf16.msra.mxu1 %v763_v3  ;;  %v62_v13 = vpack.c.bf16 %v44_v12, %v44_v12  ;;  %v757_v17 = vld [vmem:[#allocation2 + $0x40] sm:$0xff]  ;;  %277 = vmatpush.bf16.msra.mxu2 %v772_v18  ;;  %v771_v19 = vld [vmem:[#allocation2 + $0xb0] sm:$0xff]  ;;  %v770_v20 = vld [vmem:[#allocation2 + $0xa8] sm:$0xff] }
  0x12   :  { %v769_v21 = vld [vmem:[#allocation2 + $0xa0] sm:$0xff]  ;;  %v768_v31 = vld [vmem:[#allocation2 + $0x98] sm:$0xff]  ;;  %v767_v32 = vld [vmem:[#allocation2 + $0x90] sm:$0xff] }
  0x13   :  { %v61_v22 = vld [vmem:[#allocation4] sm:$0x1]  ;;  %v766_v33 = vld [vmem:[#allocation2 + $0x88] sm:$0xff]  ;;  %v780_v35 = vld [vmem:[#allocation2 + $0xf8] sm:$0xff] }
  0x14   :  { %113 = vmatpush.bf16.msra.mxu0 %v754_v4  ;;  %v765_v34 = vld [vmem:[#allocation2 + $0x80] sm:$0xff]  ;;  %360 = vmatpush.bf16.msra.mxu3 %v780_v35  ;;  %v779_v36 = vld [vmem:[#allocation2 + $0xf0] sm:$0xff]  ;;  %v778_v37 = vld [vmem:[#allocation2 + $0xe8] sm:$0xff] }
  0x15   :  { %196 = vmatpush.bf16.msra.mxu1 %v762_v5  ;;  %278 = vmatpush.bf16.msra.mxu2 %v771_v19  ;;  %v777_v38 = vld [vmem:[#allocation2 + $0xe0] sm:$0xff]  ;;  %v776_v48 = vld [vmem:[#allocation2 + $0xd8] sm:$0xff]  ;;  %v775_v49 = vld [vmem:[#allocation2 + $0xd0] sm:$0xff] }
  0x16   :  { %v144_v39 = vld [vmem:[#allocation4 + $0x1] sm:$0x1]  ;;  %v774_v50 = vld [vmem:[#allocation2 + $0xc8] sm:$0xff]  ;;  %v788_v52 = vld [vmem:[#allocation2 + $0x138] sm:$0xff] }
  0x17   :  { %v773_v51 = vld [vmem:[#allocation2 + $0xc0] sm:$0xff]  ;;  %v787_v53 = vld [vmem:[#allocation2 + $0x130] sm:$0xff]  ;;  %v786_v54 = vld [vmem:[#allocation2 + $0x128] sm:$0xff] }
  0x18   :  { %114 = vmatpush.bf16.msra.mxu0 %v753_v6  ;;  %361 = vmatpush.bf16.msra.mxu3 %v779_v36  ;;  %v785_v55 = vld [vmem:[#allocation2 + $0x120] sm:$0xff]  ;;  %v784_v3 = vld [vmem:[#allocation2 + $0x118] sm:$0xff]  ;;  %v783_v4 = vld [vmem:[#allocation2 + $0x110] sm:$0xff] }
  0x19   :  { %197 = vmatpush.bf16.msra.mxu1 %v761_v7  ;;  %279 = vmatpush.bf16.msra.mxu2 %v770_v20  ;;  %v227_v56 = vld [vmem:[#allocation4 + $0x2] sm:$0x1]  ;;  %v782_v5 = vld [vmem:[#allocation2 + $0x108] sm:$0xff]  ;;  %v796_v7 = vld [vmem:[#allocation2 + $0x178] sm:$0xff] }
  0x1a   :  { %v781_v6 = vld [vmem:[#allocation2 + $0x100] sm:$0xff]  ;;  %v792_v20 = vld [vmem:[#allocation2 + $0x158] sm:$0xff] }
  0x1c   :  { %115 = vmatpush.bf16.msra.mxu0 %v752_v8  ;;  %362 = vmatpush.bf16.msra.mxu3 %v778_v37  ;;  %v795_v8 = vld [vmem:[#allocation2 + $0x170] sm:$0xff] }
  0x1d   :  { %198 = vmatpush.bf16.msra.mxu1 %v760_v14  ;;  %280 = vmatpush.bf16.msra.mxu2 %v769_v21  ;;  %v791_v21 = vld [vmem:[#allocation2 + $0x150] sm:$0xff] }
  0x20   :  { %116 = vmatpush.bf16.msra.mxu0 %v751_v9  ;;  %363 = vmatpush.bf16.msra.mxu3 %v777_v38  ;;  %v794_v9 = vld [vmem:[#allocation2 + $0x168] sm:$0xff] }
  0x21   :  { %199 = vmatpush.bf16.msra.mxu1 %v759_v15  ;;  %281 = vmatpush.bf16.msra.mxu2 %v768_v31 }
  0x24   :  { %117 = vmatpush.bf16.msra.mxu0 %v750_v10  ;;  %364 = vmatpush.bf16.msra.mxu3 %v776_v48  ;;  %v793_v10 = vld [vmem:[#allocation2 + $0x160] sm:$0xff] }
  0x25   :  { %200 = vmatpush.bf16.msra.mxu1 %v758_v16  ;;  %282 = vmatpush.bf16.msra.mxu2 %v767_v32 }
  0x28   :  { %118 = vmatpush.bf16.msra.mxu0 %v749_v11  ;;  %365 = vmatpush.bf16.msra.mxu3 %v775_v49  ;;  %v310_v11 = vld [vmem:[#allocation4 + $0x3] sm:$0x1] }
  0x29   :  { %201 = vmatpush.bf16.msra.mxu1 %v757_v17  ;;  %283 = vmatpush.bf16.msra.mxu2 %v766_v33  ;;  %v476_v33 = vld [vmem:[#allocation4 + $0x5] sm:$0x1] }
  0x2b   :  { %119 = vmatmul.bf16.vlgmr.msra.gmra.mxu0 %v62_v13 }
  0x2c   :  { %366 = vmatpush.bf16.msra.mxu3 %v774_v50  ;;  %443 = vmatpush.bf16.msrb.mxu0 %v788_v52 }
  0x2d   :  { %284 = vmatpush.bf16.msra.mxu2 %v765_v34  ;;  %526 = vmatpush.bf16.msrb.mxu1 %v796_v7 }
  0x30   :  { %367 = vmatpush.bf16.msra.mxu3 %v773_v51  ;;  %444 = vmatpush.bf16.msrb.mxu0 %v787_v53 }
  0x31   :  { %527 = vmatpush.bf16.msrb.mxu1 %v795_v8 }
  0x34   :  { %445 = vmatpush.bf16.msrb.mxu0 %v786_v54 }
  0x35   :  { %528 = vmatpush.bf16.msrb.mxu1 %v794_v9 }
  0x38   :  { %446 = vmatpush.bf16.msrb.mxu0 %v785_v55 }
  0x39   :  { %529 = vmatpush.bf16.msrb.mxu1 %v793_v10 }
  0x3c   :  { %447 = vmatpush.bf16.msrb.mxu0 %v784_v3 }
  0x3d   :  { %530 = vmatpush.bf16.msrb.mxu1 %v792_v20 }
  0x40   :  { %448 = vmatpush.bf16.msrb.mxu0 %v783_v4 }
  0x41   :  { %531 = vmatpush.bf16.msrb.mxu1 %v791_v21 }
  0x44   :  { %449 = vmatpush.bf16.msrb.mxu0 %v782_v5 }
  0x48   :  { %450 = vmatpush.bf16.msrb.mxu0 %v781_v6 }
  0xa8   :  { %v120_v23 = vpop.f32.mrf.mxu0 }
  0xa9   :  { %v121_v24 = vadd.f32 %v120_v23, %v61_v22  ;;  %v790_v22 = vld [vmem:[#allocation2 + $0x148] sm:$0xff]  ;;  %v789_v23 = vld [vmem:[#allocation2 + $0x140] sm:$0xff] }
  0xaa   :  { %532 = vmatpush.bf16.msrb.mxu1 %v790_v22 }
  0xab   :  { %v124_v25 = vmul.f32 0.5, %v121_v24  ;;  %v393_v24 = vld [vmem:[#allocation4 + $0x4] sm:$0x1] }
  0xad   :  { %801 = vtanh.f32 %v124_v25 }
  0xae   :  { %533 = vmatpush.bf16.msrb.mxu1 %v789_v23 }
  0xb0   :  { %v122_v26 = vpop.f32.mrf.mxu0 }
  0xb3   :  { %v802_v27 = vpop.eup %801 }
  0xb4   :  { %v126_v28 = vmul.f32 0.5, %v802_v27 }
  0xb6   :  { %v127_v29 = vadd.f32 0.5, %v126_v28 }
  0xb8   :  { %v145_v30 = vpack.c.bf16 %v127_v29, %v127_v29 }
  0xba   :  { %202 = vmatmul.bf16.vlgmr.msra.gmra.mxu1 %v145_v30 }
 0x137   :  { %v203_v40 = vpop.f32.mrf.mxu1 }
 0x138   :  { %v204_v41 = vadd.f32 %v203_v40, %v144_v39 }
 0x13a   :  { %v207_v42 = vmul.f32 0.5, %v204_v41 }
 0x13c   :  { %803 = vtanh.f32 %v207_v42 }
 0x13f   :  { %v205_v43 = vpop.f32.mrf.mxu1 }
 0x142   :  { %v804_v44 = vpop.eup %803 }
 0x143   :  { %v209_v45 = vmul.f32 0.5, %v804_v44 }
 0x145   :  { %v210_v46 = vadd.f32 0.5, %v209_v45 }
 0x147   :  { %v228_v47 = vpack.c.bf16 %v210_v46, %v210_v46 }
 0x149   :  { %285 = vmatmul.bf16.vlgmr.msra.gmra.mxu2 %v228_v47 }
 0x1cc   :  { %v286_v57 = vpop.f32.mrf.mxu2 }
 0x1cd   :  { %v287_v58 = vadd.f32 %v286_v57, %v227_v56 }
 0x1cf   :  { %v290_v59 = vmul.f32 0.5, %v287_v58 }
 0x1d1   :  { %805 = vtanh.f32 %v290_v59 }
 0x1d4   :  { %v288_v60 = vpop.f32.mrf.mxu2 }
 0x1d7   :  { %v806_v62 = vpop.eup %805 }
 0x1d8   :  { %v292_v63 = vmul.f32 0.5, %v806_v62 }
 0x1da   :  { %v293_v1 = vadd.f32 0.5, %v292_v63 }
 0x1dc   :  { %v311_v2 = vpack.c.bf16 %v293_v1, %v293_v1  ;;  %547 = vst.msk [vmem:[%s925_s3] sm:$0x1] %vm898_vm0, %v293_v1 }
 0x1de   :  { %368 = vmatmul.bf16.vlgmr.msra.gmra.mxu3 %v311_v2 }
 0x261   :  { %v369_v12 = vpop.f32.mrf.mxu3 }
 0x262   :  { %v370_v13 = vadd.f32 %v369_v12, %v310_v11 }
 0x264   :  { %v373_v14 = vmul.f32 0.5, %v370_v13 }
 0x266   :  { %807 = vtanh.f32 %v373_v14 }
 0x269   :  { %v371_v15 = vpop.f32.mrf.mxu3 }
 0x26c   :  { %v808_v16 = vpop.eup %807 }
 0x26d   :  { %v375_v17 = vmul.f32 0.5, %v808_v16 }
 0x26f   :  { %v376_v18 = vadd.f32 0.5, %v375_v17 }
 0x271   :  { %548 = vst.msk [vmem:[%s925_s3 + $0x1] sm:$0x1] %vm898_vm0, %v376_v18  ;;  %v394_v19 = vpack.c.bf16 %v376_v18, %v376_v18 }
 0x273   :  { %451 = vmatmul.bf16.vlgmr.msrb.gmra.mxu0 %v394_v19 }
 0x2f0   :  { %v452_v25 = vpop.f32.mrf.mxu0 }
 0x2f1   :  { %v453_v26 = vadd.f32 %v452_v25, %v393_v24 }
 0x2f3   :  { %v456_v27 = vmul.f32 0.5, %v453_v26 }
 0x2f5   :  { %809 = vtanh.f32 %v456_v27 }
 0x2f8   :  { %v454_v28 = vpop.f32.mrf.mxu0 }
 0x2fb   :  { %v810_v29 = vpop.eup %809 }
 0x2fc   :  { %v458_v30 = vmul.f32 0.5, %v810_v29 }
 0x2fe   :  { %v459_v31 = vadd.f32 0.5, %v458_v30 }
 0x300   :  { %549 = vst.msk [vmem:[%s925_s3 + $0x2] sm:$0x1] %vm898_vm0, %v459_v31  ;;  %v477_v32 = vpack.c.bf16 %v459_v31, %v459_v31 }
 0x302   :  { %534 = vmatmul.bf16.vlgmr.msrb.gmra.mxu1 %v477_v32 }
 0x37f   :  { %v535_v34 = vpop.f32.mrf.mxu1 }
 0x380   :  { %v536_v35 = vadd.f32 %v535_v34, %v476_v33 }
 0x382   :  { %v539_v36 = vmul.f32 0.5, %v536_v35 }
 0x384   :  { %811 = vtanh.f32 %v539_v36 }
 0x387   :  { %v537_v37 = vpop.f32.mrf.mxu1 }
 0x38a   :  { %v812_v38 = vpop.eup %811 }
 0x38b   :  { %v541_v39 = vmul.f32 0.5, %v812_v38 }
 0x38d   :  { %v542_v40 = vadd.f32 0.5, %v541_v39 }
 0x38f   :  { %550 = vst.msk [vmem:[%s925_s3 + $0x3] sm:$0x1] %vm898_vm0, %v542_v40 }
 0x390   :  { %555 = vsyncpa [#allocation3], 1 }
 0x391   :  { %556 = vsyncpa [#allocation5], 1 }

</bundles_post_ra>
